<compile_context>
chip_gen: v5e
topology: v5e:2x2
jax: 0.10.0
libtpu: 0.0.40
codegen_flags: <defaults>
</compile_context>

<pallas_src>
import jax
import jax.numpy as jnp
from jax.experimental import pallas as pl
from jax.experimental.pallas import tpu as pltpu

# true layer sizes from the nn.Module
LAYER_SIZES = [(5, 12), (12, 32), (32, 64), (64, 4)]
STATE_DIM, ACT_DIM = 4, 1
H1_PAD, H2_PAD, H3_PAD, OUT_PAD = 128, 128, 128, 8
MAX_BATCH_TILE = 2048   # sweep 1024-4096; VMEM at 2048 is ~a few MiB, far below limits


def _num_tensorcores():
    """Best-effort TensorCores-per-chip (2 on v7x, 1 on v5e/v6e); never raises."""
    try:
        info = pltpu.get_tpu_info()
        for name in ("num_cores", "core_count", "num_tensorcores",
                     "tensorcores_per_chip"):
            v = getattr(info, name, None)
            if v:
                return max(1, int(v))
    except Exception:
        pass
    try:
        return max(1, int(getattr(jax.devices()[0], "num_cores", 1) or 1))
    except Exception:
        return 1


NUM_CORES = _num_tensorcores()


def _batch_tiling(batch, num_cores=NUM_CORES):
    """Pick (tile, n_tiles, padded_batch).

    Tile is a multiple of 16 (bf16 sublane packing), capped at MAX_BATCH_TILE.
    Only chips with >= 2 TensorCores (v7x) force the grid to a multiple of the
    core count; on single-TC chips (v5e/v6e) extra grid steps are pure overhead.
    """
    bp = -(-batch // 16) * 16                       # round_up(batch, 16)
    n_tiles = max(1, -(-bp // MAX_BATCH_TILE))      # cdiv
    if num_cores > 1 and bp >= 16 * num_cores:
        n_tiles = -(-n_tiles // num_cores) * num_cores
    per = -(-bp // n_tiles)                         # cdiv
    tile = -(-per // 16) * 16                       # round_up(per, 16)
    return tile, n_tiles, tile * n_tiles


def _mlp_kernel(s_ref, a_ref,
                w1s_ref, w1a_ref, b1_ref,
                w2_ref, b2_ref,
                w3_ref, b3_ref,
                w4_ref, b4_ref,
                o_ref):
    """Fused 4-layer MLP on one batch tile; layer-1 input assembled in-kernel."""
    s = s_ref[...]                                    # (BT, 4) f32
    a = a_ref[...]                                    # (BT, 1) f32
    # Layer 1: cat([state, act]) @ W1  ==  state @ W1[:4]  +  act * W1[4]
    h = jnp.dot(s, w1s_ref[...], preferred_element_type=jnp.float32)
    h = h + a * w1a_ref[...] + b1_ref[...]            # broadcast mul/add on VPU
    h = jnp.maximum(h, 0.0)
    # Layers 2-4: bf16 MXU operands, f32 accumulation / bias / ReLU.
    h = jnp.dot(h.astype(jnp.bfloat16), w2_ref[...],
                preferred_element_type=jnp.float32) + b2_ref[...]
    h = jnp.maximum(h, 0.0)
    h = jnp.dot(h.astype(jnp.bfloat16), w3_ref[...],
                preferred_element_type=jnp.float32) + b3_ref[...]
    h = jnp.maximum(h, 0.0)
    o_ref[...] = (jnp.dot(h.astype(jnp.bfloat16), w4_ref[...],
                          preferred_element_type=jnp.float32) + b4_ref[...])


def _pad2(w, rows, cols, dtype):
    out = jnp.zeros((rows, cols), jnp.float32).at[:w.shape[0], :w.shape[1]].set(w)
    return out.astype(dtype)


def init_params(key):
    """Deterministic init matching nn.Linear shapes (same uniform scheme).

    Returns (pallas_params, raw_params).  Pallas weights are stored transposed
    vs. PyTorch ((in, out)), zero-padded, layers 2-4 in bf16 for the MXU; biases
    and the tiny layer-1 pieces stay f32.
    """
    raw = []
    for fan_in, fan_out in LAYER_SIZES:
        key, kw, kb = jax.random.split(key, 3)
        bound = 1.0 / jnp.sqrt(float(fan_in))
        w = jax.random.uniform(kw, (fan_in, fan_out), jnp.float32, -bound, bound)
        b = jax.random.uniform(kb, (fan_out,), jnp.float32, -bound, bound)
        raw.append((w, b))

    (w1, b1), (w2, b2), (w3, b3), (w4, b4) = raw
    pallas_params = (
        _pad2(w1[:STATE_DIM], STATE_DIM, H1_PAD, jnp.float32),   # w1s (4,128)  f32
        _pad2(w1[STATE_DIM:], ACT_DIM, H1_PAD, jnp.float32),     # w1a (1,128)  f32
        _pad2(b1[None, :], 1, H1_PAD, jnp.float32),              # b1  (1,128)  f32
        _pad2(w2, H1_PAD, H2_PAD, jnp.bfloat16),                 # w2  (128,128) bf16
        _pad2(b2[None, :], 1, H2_PAD, jnp.float32),              # b2  (1,128)  f32
        _pad2(w3, H2_PAD, H3_PAD, jnp.bfloat16),                 # w3  (128,128) bf16
        _pad2(b3[None, :], 1, H3_PAD, jnp.float32),              # b3  (1,128)  f32
        _pad2(w4, H3_PAD, OUT_PAD, jnp.bfloat16),                # w4  (128,8)  bf16
        _pad2(b4[None, :], 1, OUT_PAD, jnp.float32),             # b4  (1,8)    f32
    )
    return pallas_params, raw


@jax.jit
def fake_cartpole_forward(state, act, *pallas_params):
    """JAX/Pallas equivalent of fake_cartpole_env.forward(state, act)."""
    if state.ndim == 1:
        state = state[None, :]
    if act.ndim == 1:
        act = act[None, :]
    state = state.astype(jnp.float32)
    act = act.astype(jnp.float32)

    B = state.shape[0]
    tile, n_tiles, Bp = _batch_tiling(B)
    if Bp != B:                                        # single pad per array (rows only)
        state = jnp.pad(state, ((0, Bp - B), (0, 0)))
        act = jnp.pad(act, ((0, Bp - B), (0, 0)))

    const = lambda i: (0, 0)   # weights/biases: same block every grid step (DMA'd once)
    in_specs = [
        pl.BlockSpec((tile, STATE_DIM), lambda i: (i, 0)),     # state tile
        pl.BlockSpec((tile, ACT_DIM), lambda i: (i, 0)),       # act tile
        pl.BlockSpec((STATE_DIM, H1_PAD), const),              # w1s
        pl.BlockSpec((ACT_DIM, H1_PAD), const),                # w1a
        pl.BlockSpec((1, H1_PAD), const),                      # b1
        pl.BlockSpec((H1_PAD, H2_PAD), const),                 # w2
        pl.BlockSpec((1, H2_PAD), const),                      # b2
        pl.BlockSpec((H2_PAD, H3_PAD), const),                 # w3
        pl.BlockSpec((1, H3_PAD), const),                      # b3
        pl.BlockSpec((H3_PAD, OUT_PAD), const),                # w4
        pl.BlockSpec((1, OUT_PAD), const),                     # b4
    ]

    out_pad = pl.pallas_call(
        _mlp_kernel,
        out_shape=jax.ShapeDtypeStruct((Bp, OUT_PAD), jnp.float32),
        grid=(n_tiles,),
        in_specs=in_specs,
        out_specs=pl.BlockSpec((tile, OUT_PAD), lambda i: (i, 0)),
        compiler_params=pltpu.CompilerParams(
            dimension_semantics=("parallel",)),
    )(state, act, *pallas_params)

    return out_pad[:B, :4]


def _reference_forward(state, act, raw_params):
    """Pure-JAX f32 reference mirroring the PyTorch forward."""
    if state.ndim == 1:
        state = state[None, :]
    if act.ndim == 1:
        act = act[None, :]
    x = jnp.concatenate([state.astype(jnp.float32), act.astype(jnp.float32)], -1)
    for i, (w, b) in enumerate(raw_params):
        x = x @ w + b
        if i < len(raw_params) - 1:
            x = jnp.maximum(x, 0.0)
    return x


if __name__ == "__main__":
    key = jax.random.PRNGKey(0)
    kp, ks, ka = jax.random.split(key, 3)
    pallas_params, raw_params = init_params(kp)

    # small example consistent with the module: cartpole-like obs + binary action
    batch = 2
    state = jax.random.uniform(ks, (batch, 4), jnp.float32, -0.05, 0.05)
    act = jax.random.randint(ka, (batch, 1), 0, 2).astype(jnp.float32)
    out = jax.block_until_ready(fake_cartpole_forward(state, act, *pallas_params))
    ref = _reference_forward(state, act, raw_params)
    assert out.shape == (batch, 4), out.shape
    # bf16 MXU operands (layers 2-4) => relaxed tolerance vs. the f32 reference.
    assert jnp.allclose(out, ref, atol=5e-2, rtol=5e-2), (out, ref)

    # odd batch exercises row padding; batch > MAX_BATCH_TILE exercises the grid path
    for batch2 in (300, 2500):
        ks2, ka2 = jax.random.split(jax.random.fold_in(ks, batch2))
        s2 = jax.random.uniform(ks2, (batch2, 4), jnp.float32, -0.05, 0.05)
        a2 = jax.random.randint(ka2, (batch2, 1), 0, 2).astype(jnp.float32)
        o2 = jax.block_until_ready(fake_cartpole_forward(s2, a2, *pallas_params))
        r2 = _reference_forward(s2, a2, raw_params)
        assert o2.shape == (batch2, 4), o2.shape
        assert jnp.allclose(o2, r2, atol=5e-2, rtol=5e-2)

    # TODO(synk): step()/reset()/phyloss_f()/action_space.sample() are host-side env
    # bookkeeping around this forward pass, not kernel work, and are left in JAX/host.
    print("KERNEL_OK")
</pallas_src>

<mosaic_0001>
module attributes {stable_mosaic.version = 11 : i64} {
  func.func @_mlp_kernel(%arg0: i32, %arg1: memref<16x4xf32, #tpu.memory_space<vmem>>, %arg2: memref<16x1xf32, #tpu.memory_space<vmem>>, %arg3: memref<4x128xf32, #tpu.memory_space<vmem>>, %arg4: memref<1x128xf32, #tpu.memory_space<vmem>>, %arg5: memref<1x128xf32, #tpu.memory_space<vmem>>, %arg6: memref<128x128xbf16, #tpu.memory_space<vmem>>, %arg7: memref<1x128xf32, #tpu.memory_space<vmem>>, %arg8: memref<128x128xbf16, #tpu.memory_space<vmem>>, %arg9: memref<1x128xf32, #tpu.memory_space<vmem>>, %arg10: memref<128x8xbf16, #tpu.memory_space<vmem>>, %arg11: memref<1x8xf32, #tpu.memory_space<vmem>>, %arg12: memref<16x8xf32, #tpu.memory_space<vmem>>) attributes {dimension_semantics = [#tpu.dimension_semantics<parallel>], iteration_bounds = array<i64: 1>, scalar_prefetch = 0 : i64, scratch_operands = 0 : i64, tpu.core_type = #tpu.core_type<tc>, window_params = [{transform_indices = @transform_0, window_bounds = array<i64: 16, 4>}, {transform_indices = @transform_1, window_bounds = array<i64: 16, 1>}, {pipeline_mode = #tpu.pipeline_mode<synchronous>, transform_indices = @transform_2, window_bounds = array<i64: 4, 128>}, {pipeline_mode = #tpu.pipeline_mode<synchronous>, transform_indices = @transform_3, window_bounds = array<i64: 1, 128>}, {pipeline_mode = #tpu.pipeline_mode<synchronous>, transform_indices = @transform_4, window_bounds = array<i64: 1, 128>}, {pipeline_mode = #tpu.pipeline_mode<synchronous>, transform_indices = @transform_5, window_bounds = array<i64: 128, 128>}, {pipeline_mode = #tpu.pipeline_mode<synchronous>, transform_indices = @transform_6, window_bounds = array<i64: 1, 128>}, {pipeline_mode = #tpu.pipeline_mode<synchronous>, transform_indices = @transform_7, window_bounds = array<i64: 128, 128>}, {pipeline_mode = #tpu.pipeline_mode<synchronous>, transform_indices = @transform_8, window_bounds = array<i64: 1, 128>}, {pipeline_mode = #tpu.pipeline_mode<synchronous>, transform_indices = @transform_9, window_bounds = array<i64: 128, 8>}, {pipeline_mode = #tpu.pipeline_mode<synchronous>, transform_indices = @transform_10, window_bounds = array<i64: 1, 8>}, {transform_indices = @transform_11, window_bounds = array<i64: 16, 8>}]} {
    %c0 = arith.constant 0 : index
    %c0_0 = arith.constant 0 : index
    %0 = vector.load %arg1[%c0, %c0_0] : memref<16x4xf32, #tpu.memory_space<vmem>>, vector<16x4xf32>
    %c0_1 = arith.constant 0 : index
    %c0_2 = arith.constant 0 : index
    %1 = vector.load %arg2[%c0_1, %c0_2] : memref<16x1xf32, #tpu.memory_space<vmem>>, vector<16x1xf32>
    %c0_3 = arith.constant 0 : index
    %c0_4 = arith.constant 0 : index
    %2 = vector.load %arg3[%c0_3, %c0_4] : memref<4x128xf32, #tpu.memory_space<vmem>>, vector<4x128xf32>
    %cst = arith.constant dense<0.000000e+00> : vector<16x128xf32>
    %3 = tpu.matmul %0, %2, %cst {dimension_numbers = #tpu.dot_dimension_numbers<[1], [0], [0], [1], [0, 0, 1, 1], [], []>} : vector<16x4xf32>, vector<4x128xf32>, vector<16x128xf32> -> vector<16x128xf32>
    %c0_5 = arith.constant 0 : index
    %c0_6 = arith.constant 0 : index
    %4 = vector.load %arg4[%c0_5, %c0_6] : memref<1x128xf32, #tpu.memory_space<vmem>>, vector<1x128xf32>
    %5 = vector.broadcast %1 : vector<16x1xf32> to vector<16x128xf32>
    %6 = vector.broadcast %4 : vector<1x128xf32> to vector<16x128xf32>
    %7 = arith.mulf %5, %6 : vector<16x128xf32>
    %8 = arith.addf %3, %7 : vector<16x128xf32>
    %c0_7 = arith.constant 0 : index
    %c0_8 = arith.constant 0 : index
    %9 = vector.load %arg5[%c0_7, %c0_8] : memref<1x128xf32, #tpu.memory_space<vmem>>, vector<1x128xf32>
    %10 = vector.broadcast %9 : vector<1x128xf32> to vector<16x128xf32>
    %11 = arith.addf %8, %10 : vector<16x128xf32>
    %cst_9 = arith.constant 0.000000e+00 : f32
    %12 = vector.broadcast %cst_9 : f32 to vector<16x128xf32>
    %13 = arith.maximumf %11, %12 : vector<16x128xf32>
    %14 = arith.truncf %13 : vector<16x128xf32> to vector<16x128xbf16>
    %c0_10 = arith.constant 0 : index
    %c0_11 = arith.constant 0 : index
    %15 = vector.load %arg6[%c0_10, %c0_11] : memref<128x128xbf16, #tpu.memory_space<vmem>>, vector<128x128xbf16>
    %cst_12 = arith.constant dense<0.000000e+00> : vector<16x128xf32>
    %16 = tpu.matmul %14, %15, %cst_12 {dimension_numbers = #tpu.dot_dimension_numbers<[1], [0], [0], [1], [0, 0, 1, 1], [], []>} : vector<16x128xbf16>, vector<128x128xbf16>, vector<16x128xf32> -> vector<16x128xf32>
    %c0_13 = arith.constant 0 : index
    %c0_14 = arith.constant 0 : index
    %17 = vector.load %arg7[%c0_13, %c0_14] : memref<1x128xf32, #tpu.memory_space<vmem>>, vector<1x128xf32>
    %18 = vector.broadcast %17 : vector<1x128xf32> to vector<16x128xf32>
    %19 = arith.addf %16, %18 : vector<16x128xf32>
    %cst_15 = arith.constant 0.000000e+00 : f32
    %20 = vector.broadcast %cst_15 : f32 to vector<16x128xf32>
    %21 = arith.maximumf %19, %20 : vector<16x128xf32>
    %22 = arith.truncf %21 : vector<16x128xf32> to vector<16x128xbf16>
    %c0_16 = arith.constant 0 : index
    %c0_17 = arith.constant 0 : index
    %23 = vector.load %arg8[%c0_16, %c0_17] : memref<128x128xbf16, #tpu.memory_space<vmem>>, vector<128x128xbf16>
    %cst_18 = arith.constant dense<0.000000e+00> : vector<16x128xf32>
    %24 = tpu.matmul %22, %23, %cst_18 {dimension_numbers = #tpu.dot_dimension_numbers<[1], [0], [0], [1], [0, 0, 1, 1], [], []>} : vector<16x128xbf16>, vector<128x128xbf16>, vector<16x128xf32> -> vector<16x128xf32>
    %c0_19 = arith.constant 0 : index
    %c0_20 = arith.constant 0 : index
    %25 = vector.load %arg9[%c0_19, %c0_20] : memref<1x128xf32, #tpu.memory_space<vmem>>, vector<1x128xf32>
    %26 = vector.broadcast %25 : vector<1x128xf32> to vector<16x128xf32>
    %27 = arith.addf %24, %26 : vector<16x128xf32>
    %cst_21 = arith.constant 0.000000e+00 : f32
    %28 = vector.broadcast %cst_21 : f32 to vector<16x128xf32>
    %29 = arith.maximumf %27, %28 : vector<16x128xf32>
    %30 = arith.truncf %29 : vector<16x128xf32> to vector<16x128xbf16>
    %c0_22 = arith.constant 0 : index
    %c0_23 = arith.constant 0 : index
    %31 = vector.load %arg10[%c0_22, %c0_23] : memref<128x8xbf16, #tpu.memory_space<vmem>>, vector<128x8xbf16>
    %cst_24 = arith.constant dense<0.000000e+00> : vector<16x8xf32>
    %32 = tpu.matmul %30, %31, %cst_24 {dimension_numbers = #tpu.dot_dimension_numbers<[1], [0], [0], [1], [0, 0, 1, 1], [], []>} : vector<16x128xbf16>, vector<128x8xbf16>, vector<16x8xf32> -> vector<16x8xf32>
    %c0_25 = arith.constant 0 : index
    %c0_26 = arith.constant 0 : index
    %33 = vector.load %arg11[%c0_25, %c0_26] : memref<1x8xf32, #tpu.memory_space<vmem>>, vector<1x8xf32>
    %34 = vector.broadcast %33 : vector<1x8xf32> to vector<16x8xf32>
    %35 = arith.addf %32, %34 : vector<16x8xf32>
    %c0_27 = arith.constant 0 : index
    %c0_28 = arith.constant 0 : index
    %36 = vector.load %arg12[%c0_27, %c0_28] : memref<16x8xf32, #tpu.memory_space<vmem>>, vector<16x8xf32>
    tpu.vector_store %arg12[%c0_27, %c0_28], %35 {strides = array<i32>} : memref<16x8xf32, #tpu.memory_space<vmem>>, vector<16x8xf32>,
    return
  }
  func.func @transform_0(%arg0: i32) -> (i32, i32) {
    %c0_i32 = arith.constant 0 : i32
    %c0_i32_0 = arith.constant 0 : i32
    return %arg0, %c0_i32 : i32, i32
  }
  func.func @transform_1(%arg0: i32) -> (i32, i32) {
    %c0_i32 = arith.constant 0 : i32
    %c0_i32_0 = arith.constant 0 : i32
    return %arg0, %c0_i32 : i32, i32
  }
  func.func @transform_2(%arg0: i32) -> (i32, i32) {
    %c0_i32 = arith.constant 0 : i32
    %c0_i32_0 = arith.constant 0 : i32
    %c0_i32_1 = arith.constant 0 : i32
    return %c0_i32, %c0_i32_0 : i32, i32
  }
  func.func @transform_3(%arg0: i32) -> (i32, i32) {
    %c0_i32 = arith.constant 0 : i32
    %c0_i32_0 = arith.constant 0 : i32
    %c0_i32_1 = arith.constant 0 : i32
    return %c0_i32, %c0_i32_0 : i32, i32
  }
  func.func @transform_4(%arg0: i32) -> (i32, i32) {
    %c0_i32 = arith.constant 0 : i32
    %c0_i32_0 = arith.constant 0 : i32
    %c0_i32_1 = arith.constant 0 : i32
    return %c0_i32, %c0_i32_0 : i32, i32
  }
  func.func @transform_5(%arg0: i32) -> (i32, i32) {
    %c0_i32 = arith.constant 0 : i32
    %c0_i32_0 = arith.constant 0 : i32
    %c0_i32_1 = arith.constant 0 : i32
    return %c0_i32, %c0_i32_0 : i32, i32
  }
  func.func @transform_6(%arg0: i32) -> (i32, i32) {
    %c0_i32 = arith.constant 0 : i32
    %c0_i32_0 = arith.constant 0 : i32
    %c0_i32_1 = arith.constant 0 : i32
    return %c0_i32, %c0_i32_0 : i32, i32
  }
  func.func @transform_7(%arg0: i32) -> (i32, i32) {
    %c0_i32 = arith.constant 0 : i32
    %c0_i32_0 = arith.constant 0 : i32
    %c0_i32_1 = arith.constant 0 : i32
    return %c0_i32, %c0_i32_0 : i32, i32
  }
  func.func @transform_8(%arg0: i32) -> (i32, i32) {
    %c0_i32 = arith.constant 0 : i32
    %c0_i32_0 = arith.constant 0 : i32
    %c0_i32_1 = arith.constant 0 : i32
    return %c0_i32, %c0_i32_0 : i32, i32
  }
  func.func @transform_9(%arg0: i32) -> (i32, i32) {
    %c0_i32 = arith.constant 0 : i32
    %c0_i32_0 = arith.constant 0 : i32
    %c0_i32_1 = arith.constant 0 : i32
    return %c0_i32, %c0_i32_0 : i32, i32
  }
  func.func @transform_10(%arg0: i32) -> (i32, i32) {
    %c0_i32 = arith.constant 0 : i32
    %c0_i32_0 = arith.constant 0 : i32
    %c0_i32_1 = arith.constant 0 : i32
    return %c0_i32, %c0_i32_0 : i32, i32
  }
  func.func @transform_11(%arg0: i32) -> (i32, i32) {
    %c0_i32 = arith.constant 0 : i32
    %c0_i32_0 = arith.constant 0 : i32
    return %arg0, %c0_i32 : i32, i32
  }
}

</mosaic_0001>

<bundles_post_ra>
// kernel: fake_cartpole_forward.1
= control target key start
LH: loop header
LB: loop body
LE: loop exit
PB: predicated region body
PF: predicated region fallthrough
CT: control target
= control target key end

     0   :  { %16 = vsyncpa [#allocation3], 0  ;;  %s537_s20 = smov [#allocation2]   ;;  %s538_s22 = smov 64   ;;  %s688_s0 = inlined_call_operand.vmem [shape: f32[16,4], index: 0, kind: input, shape index: {}]   ;;  %s689_s1 = inlined_call_operand.vmem [shape: f32[16,1], index: 1, kind: input, shape index: {}]   ;;  %s690_s2 = inlined_call_operand.vmem [shape: f32[4,128], index: 2, kind: input, shape index: {}]   ;;  %s691_s3 = inlined_call_operand.vmem [shape: f32[1,128], index: 3, kind: input, shape index: {}]   ;;  %s692_s4 = inlined_call_operand.vmem [shape: f32[1,128], index: 4, kind: input, shape index: {}]   ;;  %s693_s5 = inlined_call_operand.vmem [shape: bf16[128,128], index: 5, kind: input, shape index: {}]   ;;  %s694_s6 = inlined_call_operand.vmem [shape: f32[1,128], index: 6, kind: input, shape index: {}]   ;;  %s695_s7 = inlined_call_operand.hbm [shape: bf16[128,128], index: 7, kind: input, shape index: {}]   ;;  %s696_s8 = inlined_call_operand.vmem [shape: f32[1,128], index: 8, kind: input, shape index: {}]   ;;  %s697_s9 = inlined_call_operand.vmem [shape: bf16[128,8], index: 9, kind: input, shape index: {}]   ;;  %s698_s10 = inlined_call_operand.vmem [shape: f32[1,8], index: 10, kind: input, shape index: {}]   ;;  %s699_s11 = inlined_call_operand.vmem [shape: f32[16,8], index: 11, kind: output, shape index: {}]  }
   0x1   :  { %s35_s19 = sshll.u32 %s695_s7, 4  ;;  %s37_s21 = sshll.u32 %s537_s20, 4  ;;  %s36_s19 = int_to_ptr.hbm [resolvable:$true] %s35_s19  ;;  %s38_s21 = int_to_ptr.vmem [resolvable:$true] %s37_s21 }
   0x2   :  { %s539_s23 = smov 4  }
   0x3   :  { %43 = dma.hbm_to_vmem [thread:$0]  %s36_s19, 1024, %s38_s21, [#allocation3], %s538_s22, %s538_s22, %s539_s23  }
   0x4   :  { %535 = dma.done.wait [#allocation3], 1024  }
   0x5   :  { %536 = vsyncadd [#allocation3], 4294966272  ;;  %v540_v0 = vmov 0   ;;  %vm82_vm0 = vcmask 1043456   ;;  %vm75_vm1 = vcmask 31744   ;;  %v54_v2 = vld [vmem:[%s688_s0] sm:$0xff] }
   0x6   :  { %505 = vset.pattern.permute.xlu0 %v540_v0  ;;  %v58_v1 = vld [vmem:[%s690_s2] sm:$0xf]  ;;  %v484_v4 = vld [vmem:[%s693_s5 + $0x38] sm:$0xff]  ;;  %v483_v5 = vld [vmem:[%s693_s5 + $0x30] sm:$0xff]  ;;  %vm370_vm2 = vcmask 64512  }
   0x7   :  { %v56_v3 = vld [vmem:[%s689_s1] sm:$0xff]  ;;  %378 = vmatpush.msk.msra.mxu0 %vm82_vm0, %v58_v1  ;;  %186 = vmatpush.bf16.msra.mxu1 %v484_v4  ;;  %v57_v6 = vld [vmem:[%s689_s1 + $0x8] sm:$0xff]  ;;  %v480_v10 = vld [vmem:[%s693_s5 + $0x18] sm:$0xff] }
   0x8   :  { %62 = vperm.xlu0 %505, %v56_v3   ;;  %379 = vmatmul.msk.f32.vlgmr.msra.gmra.mxu0 %vm75_vm1, %v54_v2  ;;  %v55_v7 = vld [vmem:[%s688_s0 + $0x8] sm:$0xff]  ;;  %v481_v9 = vld [vmem:[%s693_s5 + $0x20] sm:$0xff]  ;;  %v479_v11 = vld [vmem:[%s693_s5 + $0x10] sm:$0xff] }
   0x9   :  { %v482_v8 = vld [vmem:[%s693_s5 + $0x28] sm:$0xff]  ;;  %v477_v13 = vld [vmem:[%s693_s5] sm:$0xff]  ;;  %v492_v14 = vld [vmem:[#allocation2 + $0x38] sm:$0xff] }
   0xa   :  { %v478_v12 = vld [vmem:[%s693_s5 + $0x8] sm:$0xff]  ;;  %271 = vmatpush.bf16.msra.mxu2 %v492_v14  ;;  %v491_v15 = vld [vmem:[#allocation2 + $0x30] sm:$0xff]  ;;  %v489_v18 = vld [vmem:[#allocation2 + $0x20] sm:$0xff] }
   0xb   :  { %187 = vmatpush.bf16.msra.mxu1 %v483_v5  ;;  %v490_v16 = vld [vmem:[#allocation2 + $0x28] sm:$0xff]  ;;  %v506_v19 = vld [vmem:[%s691_s3] ss:$0 sm:$0xff]  ;;  %v488_v33 = vld [vmem:[#allocation2 + $0x18] sm:$0xff] }
   0xc   :  { %v507_v24 = vld [vmem:[%s692_s4] ss:$0 sm:$0xff]  ;;  %v487_v34 = vld [vmem:[#allocation2 + $0x10] sm:$0xff]  ;;  %v486_v35 = vld [vmem:[#allocation2 + $0x8] sm:$0xff] }
   0xd   :  { %v485_v36 = vld [vmem:[#allocation2] sm:$0xff]  ;;  %v500_v37 = vld [vmem:[%s697_s9 + $0x38] sm:$0xff]  ;;  %v499_v38 = vld [vmem:[%s697_s9 + $0x30] sm:$0xff] }
   0xe   :  { %272 = vmatpush.bf16.msra.mxu2 %v491_v15  ;;  %356 = vmatpush.bf16.msra.mxu3 %v500_v37  ;;  %v498_v39 = vld [vmem:[%s697_s9 + $0x28] sm:$0xff]  ;;  %v497_v40 = vld [vmem:[%s697_s9 + $0x20] sm:$0xff]  ;;  %v496_v49 = vld [vmem:[%s697_s9 + $0x18] sm:$0xff] }
   0xf   :  { %188 = vmatpush.bf16.msra.mxu1 %v482_v8  ;;  %v508_v42 = vld [vmem:[%s694_s6] ss:$0 sm:$0xff]  ;;  %v495_v50 = vld [vmem:[%s697_s9 + $0x10] sm:$0xff]  ;;  %v494_v51 = vld [vmem:[%s697_s9 + $0x8] sm:$0xff] }
  0x10   :  { %67 = vperm.xlu0 %505, %v57_v6   ;;  %380 = vmatmul.msk.f32.gmra.mxu0 %vm75_vm1, %v55_v7  ;;  %v493_v52 = vld [vmem:[%s697_s9] sm:$0xff] }
  0x11   :  { %v509_v54 = vld [vmem:[%s696_s8] ss:$0 sm:$0xff] }
  0x12   :  { %273 = vmatpush.bf16.msra.mxu2 %v490_v16  ;;  %357 = vmatpush.bf16.msra.mxu3 %v499_v38  ;;  %v510_v61 = vld [vmem:[%s698_s10] ss:$0 sm:$0xff] }
  0x13   :  { %189 = vmatpush.bf16.msra.mxu1 %v481_v9 }
  0x16   :  { %274 = vmatpush.bf16.msra.mxu2 %v489_v18  ;;  %358 = vmatpush.bf16.msra.mxu3 %v498_v39 }
  0x17   :  { %190 = vmatpush.bf16.msra.mxu1 %v480_v10 }
  0x1a   :  { %275 = vmatpush.bf16.msra.mxu2 %v488_v33  ;;  %359 = vmatpush.bf16.msra.mxu3 %v497_v40 }
  0x1b   :  { %191 = vmatpush.bf16.msra.mxu1 %v479_v11 }
  0x1e   :  { %276 = vmatpush.bf16.msra.mxu2 %v487_v34  ;;  %360 = vmatpush.bf16.msra.mxu3 %v496_v49 }
  0x1f   :  { %192 = vmatpush.bf16.msra.mxu1 %v478_v12 }
  0x22   :  { %277 = vmatpush.bf16.msra.mxu2 %v486_v35  ;;  %361 = vmatpush.bf16.msra.mxu3 %v495_v50 }
  0x23   :  { %193 = vmatpush.bf16.msra.mxu1 %v477_v13 }
  0x26   :  { %278 = vmatpush.bf16.msra.mxu2 %v485_v36  ;;  %362 = vmatpush.bf16.msra.mxu3 %v494_v51 }
  0x2a   :  { %363 = vmatpush.bf16.msra.mxu3 %v493_v52 }
  0x7a   :  { %v63_v17 = vpop.permute.xlu0 %62 }
  0x7b   :  { %v73_v21 = vmul.f32 %v506_v19, %v63_v17 }
  0x82   :  { %v68_v22 = vpop.permute.xlu0 %67 }
  0x83   :  { %v74_v25 = vmul.f32 %v506_v19, %v68_v22 }
  0x85   :  { %v103_v20 = vpop.f32.mrf.mxu0 }
  0x86   :  { %v104_v23 = vadd.f32 %v103_v20, %v73_v21 }
  0x88   :  { %v113_v27 = vadd.f32 %v507_v24, %v104_v23 }
  0x8a   :  { %v115_v30 = vmax.f32 %v113_v27, 0.0 }
  0x8d   :  { %v106_v26 = vpop.f32.mrf.mxu0 }
  0x8e   :  { %v107_v28 = vadd.f32 %v106_v26, %v74_v25 }
  0x90   :  { %v114_v29 = vadd.f32 %v507_v24, %v107_v28 }
  0x92   :  { %v116_v31 = vmax.f32 %v114_v29, 0.0 }
  0x94   :  { %v117_v32 = vpack.c.bf16 %v116_v31, %v115_v30 }
  0x96   :  { %194 = vmatmul.bf16.vlgmr.msra.gmra.mxu1 %v117_v32 }
 0x113   :  { %v195_v41 = vpop.f32.mrf.mxu1 }
 0x114   :  { %v196_v43 = vadd.f32 %v508_v42, %v195_v41 }
 0x116   :  { %v200_v46 = vmax.f32 %v196_v43, 0.0 }
 0x11b   :  { %v197_v44 = vpop.f32.mrf.mxu1 }
 0x11c   :  { %v198_v45 = vadd.f32 %v508_v42, %v197_v44 }
 0x11e   :  { %v201_v47 = vmax.f32 %v198_v45, 0.0 }
 0x120   :  { %v202_v48 = vpack.c.bf16 %v201_v47, %v200_v46 }
 0x122   :  { %279 = vmatmul.bf16.vlgmr.msra.gmra.mxu2 %v202_v48 }
 0x1a5   :  { %v280_v53 = vpop.f32.mrf.mxu2 }
 0x1a6   :  { %v281_v55 = vadd.f32 %v509_v54, %v280_v53 }
 0x1a8   :  { %v285_v58 = vmax.f32 %v281_v55, 0.0 }
 0x1ad   :  { %v282_v56 = vpop.f32.mrf.mxu2 }
 0x1ae   :  { %v283_v57 = vadd.f32 %v509_v54, %v282_v56 }
 0x1b0   :  { %v286_v59 = vmax.f32 %v283_v57, 0.0 }
 0x1b2   :  { %v287_v60 = vpack.c.bf16 %v286_v59, %v285_v58 }
 0x1b4   :  { %364 = vmatmul.bf16.vlgmr.msra.gmra.mxu3 %v287_v60 }
 0x237   :  { %v365_v62 = vpop.f32.mrf.mxu3 }
 0x238   :  { %v366_v63 = vadd.f32 %v510_v61, %v365_v62 }
 0x23a   :  { %371 = vst.msk [vmem:[%s699_s11] sm:$0xff] %vm370_vm2, %v366_v63 }
 0x23f   :  { %v367_v0 = vpop.f32.mrf.mxu3 }
 0x240   :  { %v368_v1 = vadd.f32 %v510_v61, %v367_v0 }
 0x242   :  { %372 = vst.msk [vmem:[%s699_s11 + $0x8] sm:$0xff] %vm370_vm2, %v368_v1 }
 0x243   :  { %377 = vsyncpa [#allocation3], 1 }

</bundles_post_ra>
